<compile_context>
chip_gen: v6e
topology: v6e:2x2x1
jax: 0.10.0
libtpu: 0.0.40
codegen_flags: <defaults>
</compile_context>

<pallas_src>
import functools

import jax
import jax.numpy as jnp
from jax.experimental import pallas as pl
from jax.experimental.pallas import tpu as pltpu

_LANE = 128
_SUBLANE = 8
_TILE_B = 256  # batch tile for the grid; sized well inside 32 MiB scoped VMEM


def _round_up(x, m):
    return (x + m - 1) // m * m


def _fused_critic_kernel(layout, state_ref, action_ref, slab_ref, q_ref):
    """Fused forward of BOTH critic MLPs in 3 MXU matmuls.

    The weight slab is carved with static, sublane-aligned, full-lane-width
    slices (free aligned loads).  Hidden activations are carried at full lane
    width C (zero-padded), which keeps every matmul tile-aligned and is
    mathematically exact because the padding rows/cols/biases are zero.
    """
    off = layout["offsets"]
    s_dim = layout["state_dim"]
    a_dim = layout["action_dim"]
    c = layout["c"]

    w1s = slab_ref[off["w1s"]:off["w1s"] + s_dim, :]   # (S, C)
    w1a = slab_ref[off["w1a"]:off["w1a"] + a_dim, :]   # (A, C)
    b1 = slab_ref[off["b1"]:off["b1"] + 1, :]          # (1, C)
    w2 = slab_ref[off["w2"]:off["w2"] + c, :]          # (C, C)
    b2 = slab_ref[off["b2"]:off["b2"] + 1, :]          # (1, C)
    w3 = slab_ref[off["w3"]:off["w3"] + c, :]          # (C, C)
    b3 = slab_ref[off["b3"]:off["b3"] + 1, :]          # (1, C)

    # Layer 1: folds torch's cat([state, action]) into two dots.
    h = (jnp.dot(state_ref[...], w1s, preferred_element_type=jnp.float32)
         + jnp.dot(action_ref[...], w1a, preferred_element_type=jnp.float32)
         + b1)
    h = jnp.maximum(h, 0.0)

    # Layer 2: block-diagonal fused weights.
    h = jnp.dot(h, w2, preferred_element_type=jnp.float32) + b2
    h = jnp.maximum(h, 0.0)

    # Layer 3: block-diagonal -> q1 in col 0, q2 in col 1.
    q = jnp.dot(h, w3, preferred_element_type=jnp.float32) + b3
    q_ref[...] = q[:, :2]


def pack_critic_params(params1, params2, state_dim):
    """Pack both critics' params into ONE tile-aligned f32 slab (done once).

    Returns (slab, layout) where `slab` is (R, C) f32 with every parameter
    block starting at a sublane offset that is a multiple of 8 and zero-padded
    to C = round_up(max fused width, 128) lanes.
    """
    w1a_, b1a, w2a, b2a, w3a, b3a = params1
    w1b_, b1b, w2b, b2b, w3b, b3b = params2

    d_in = w1a_.shape[0]
    a_dim = d_in - state_dim
    h0 = w1a_.shape[1]
    h1 = w2a.shape[1]
    f1, f2 = 2 * h0, 2 * h1
    c = _round_up(max(f1, f2, 2), _LANE)

    # Layer 1: concat along output dim, split rows by input source.
    w1 = jnp.concatenate([w1a_, w1b_], axis=1)          # (S+A, F1)
    w1_state = w1[:state_dim]                           # (S, F1)
    w1_action = w1[state_dim:]                          # (A, F1)
    b1 = jnp.concatenate([b1a, b1b], axis=-1)           # (1, F1)

    # Layer 2: block-diagonal.
    z2 = jnp.zeros((h0, h1), jnp.float32)
    w2 = jnp.concatenate(
        [jnp.concatenate([w2a, z2], axis=1),
         jnp.concatenate([z2, w2b], axis=1)], axis=0)   # (F1, F2)
    b2 = jnp.concatenate([b2a, b2b], axis=-1)           # (1, F2)

    # Layer 3: block-diagonal into a 2-wide output.
    z3 = jnp.zeros((h1, 1), jnp.float32)
    w3 = jnp.concatenate(
        [jnp.concatenate([w3a, z3], axis=1),
         jnp.concatenate([z3, w3b], axis=1)], axis=0)   # (F2, 2)
    b3 = jnp.concatenate([b3a, b3b], axis=-1)           # (1, 2)

    # Slab layout: each block height padded to a multiple of 8 sublanes;
    # layers 2/3 get C rows because hidden activations are C lanes wide.
    blocks = [
        ("w1s", w1_state, _round_up(state_dim, _SUBLANE)),
        ("w1a", w1_action, _round_up(a_dim, _SUBLANE)),
        ("b1", b1, _SUBLANE),
        ("w2", w2, c),
        ("b2", b2, _SUBLANE),
        ("w3", w3, c),
        ("b3", b3, _SUBLANE),
    ]
    offsets = {}
    rows = 0
    for name, _, height in blocks:
        offsets[name] = rows
        rows += height

    slab = jnp.zeros((rows, c), jnp.float32)
    for name, arr, _ in blocks:
        r0 = offsets[name]
        slab = slab.at[r0:r0 + arr.shape[0], :arr.shape[1]].set(
            arr.astype(jnp.float32))

    layout = dict(state_dim=state_dim, action_dim=a_dim, h0=h0, h1=h1,
                  f1=f1, f2=f2, c=c, rows=rows, offsets=offsets)
    return slab, layout


def critic_forward(state, action, packed_params):
    """Forward pass of both critics via one fused Pallas kernel.

    Returns (q1, q2), each (B, 1), matching the torch module's output tuple.
    """
    slab, layout = packed_params
    state = state.astype(jnp.float32)
    action = action.astype(jnp.float32)

    batch = state.shape[0]
    s_dim = layout["state_dim"]
    a_dim = layout["action_dim"]
    h0, h1 = layout["h0"], layout["h1"]
    rows, c = layout["rows"], layout["c"]

    # Batch grid: one block if the batch is small, otherwise 256-row tiles
    # (boundary tile handled by Pallas OOB padding/masking; rows independent).
    tile_b = batch if batch <= _TILE_B else _TILE_B
    grid = (pl.cdiv(batch, tile_b),)

    # Advisory cost hint counting only useful (non-structural-zero) flops.
    flops = 2 * batch * ((s_dim + a_dim) * 2 * h0 + 2 * h0 * h1 + 2 * h1)
    bytes_accessed = 4 * (batch * (s_dim + a_dim + 2) + rows * c)
    cost = pl.CostEstimate(flops=int(flops), transcendentals=0,
                           bytes_accessed=int(bytes_accessed))

    kernel = functools.partial(_fused_critic_kernel, layout)

    q = pl.pallas_call(
        kernel,
        out_shape=jax.ShapeDtypeStruct((batch, 2), jnp.float32),
        grid_spec=pltpu.PrefetchScalarGridSpec(
            num_scalar_prefetch=0,
            grid=grid,
            in_specs=[
                pl.BlockSpec((tile_b, s_dim), lambda i: (i, 0)),
                pl.BlockSpec((tile_b, a_dim), lambda i: (i, 0)),
                # Weight slab: same block every step -> resident, DMA'd once.
                pl.BlockSpec((rows, c), lambda i: (0, 0)),
            ],
            out_specs=pl.BlockSpec((tile_b, 2), lambda i: (i, 0)),
        ),
        compiler_params=pltpu.CompilerParams(
            dimension_semantics=("parallel",)),
        cost_estimate=cost,
    )(state, action, slab)

    # Lane-packed output; split into the module's (q1, q2) tuple.
    return q[:, 0:1], q[:, 1:2]


def make_mlp_params(key, in_dim, mlp_dims, out_dim):
    """Orthogonal-init params (matches util.orthogonal_init intent).

    Weights stored as [in, out]; biases as [1, out] (zero-initialized).
    """
    dims = [in_dim] + list(mlp_dims) + [out_dim]
    ortho = jax.nn.initializers.orthogonal()
    params = []
    for i in range(len(dims) - 1):
        key, sub = jax.random.split(key)
        w = ortho(sub, (dims[i], dims[i + 1]), jnp.float32)
        b = jnp.zeros((1, dims[i + 1]), jnp.float32)
        params += [w, b]
    return params


def critic_reference(state, action, params1, params2):
    """Pure-jnp reference (un-fused, mirrors the torch module) for checking."""
    x = jnp.concatenate([state, action], axis=-1).astype(jnp.float32)

    def mlp(p):
        w1, b1, w2, b2, w3, b3 = p
        h = jnp.maximum(x @ w1 + b1, 0.0)
        h = jnp.maximum(h @ w2 + b2, 0.0)
        return h @ w3 + b3

    return mlp(params1), mlp(params2)


if __name__ == "__main__":
    # Small, module-consistent shapes.
    state_dim = 24
    action_dim = 8
    mlp_dims = [32, 32]

    key = jax.random.PRNGKey(0)
    k_state, k_action, k_p1, k_p2 = jax.random.split(key, 4)

    params1 = make_mlp_params(k_p1, state_dim + action_dim, mlp_dims, 1)
    params2 = make_mlp_params(k_p2, state_dim + action_dim, mlp_dims, 1)

    # One-time parameter packing (outside the per-step hot path).
    packed = jax.block_until_ready(
        pack_critic_params(params1, params2, state_dim))

    # Check 1: tiny inference-style batch (single grid step).
    # Check 2: training-style batch exercising the batch grid + resident slab.
    for batch in (8, 512):
        ks, ka = jax.random.split(jax.random.fold_in(key, batch))
        state = jax.random.normal(ks, (batch, state_dim), jnp.float32)
        action = jax.random.normal(ka, (batch, action_dim), jnp.float32)

        q1, q2 = critic_forward(state, action, packed)
        jax.block_until_ready((q1, q2))

        r1, r2 = critic_reference(state, action, params1, params2)
        assert q1.shape == (batch, 1) and q2.shape == (batch, 1)
        assert jnp.allclose(q1, r1, atol=1e-4, rtol=1e-4)
        assert jnp.allclose(q2, r2, atol=1e-4, rtol=1e-4)

    print("KERNEL_OK")
</pallas_src>

<mosaic_0001>
module attributes {stable_mosaic.version = 11 : i64} {
  func.func @_fused_critic_kernel(%arg0: i32, %arg1: memref<8x24xf32, #tpu.memory_space<vmem>>, %arg2: memref<8x8xf32, #tpu.memory_space<vmem>>, %arg3: memref<312x128xf32, #tpu.memory_space<vmem>>, %arg4: memref<8x2xf32, #tpu.memory_space<vmem>>) attributes {dimension_semantics = [#tpu.dimension_semantics<parallel>], iteration_bounds = array<i64: 1>, scalar_prefetch = 0 : i64, scratch_operands = 0 : i64, tpu.core_type = #tpu.core_type<tc>, window_params = [{transform_indices = @transform_0, window_bounds = array<i64: 8, 24>}, {transform_indices = @transform_1, window_bounds = array<i64: 8, 8>}, {pipeline_mode = #tpu.pipeline_mode<synchronous>, transform_indices = @transform_2, window_bounds = array<i64: 312, 128>}, {transform_indices = @transform_3, window_bounds = array<i64: 8, 2>}]} {
    %c0 = arith.constant 0 : index
    %c0_0 = arith.constant 0 : index
    %0 = vector.load %arg3[%c0, %c0_0] : memref<312x128xf32, #tpu.memory_space<vmem>>, vector<24x128xf32>
    %c24 = arith.constant 24 : index
    %c0_1 = arith.constant 0 : index
    %1 = vector.load %arg3[%c24, %c0_1] : memref<312x128xf32, #tpu.memory_space<vmem>>, vector<8x128xf32>
    %c32 = arith.constant 32 : index
    %c0_2 = arith.constant 0 : index
    %2 = vector.load %arg3[%c32, %c0_2] : memref<312x128xf32, #tpu.memory_space<vmem>>, vector<1x128xf32>
    %c40 = arith.constant 40 : index
    %c0_3 = arith.constant 0 : index
    %3 = vector.load %arg3[%c40, %c0_3] : memref<312x128xf32, #tpu.memory_space<vmem>>, vector<128x128xf32>
    %c168 = arith.constant 168 : index
    %c0_4 = arith.constant 0 : index
    %4 = vector.load %arg3[%c168, %c0_4] : memref<312x128xf32, #tpu.memory_space<vmem>>, vector<1x128xf32>
    %c176 = arith.constant 176 : index
    %c0_5 = arith.constant 0 : index
    %5 = vector.load %arg3[%c176, %c0_5] : memref<312x128xf32, #tpu.memory_space<vmem>>, vector<128x128xf32>
    %c304 = arith.constant 304 : index
    %c0_6 = arith.constant 0 : index
    %6 = vector.load %arg3[%c304, %c0_6] : memref<312x128xf32, #tpu.memory_space<vmem>>, vector<1x128xf32>
    %c0_7 = arith.constant 0 : index
    %c0_8 = arith.constant 0 : index
    %7 = vector.load %arg1[%c0_7, %c0_8] : memref<8x24xf32, #tpu.memory_space<vmem>>, vector<8x24xf32>
    %cst = arith.constant dense<0.000000e+00> : vector<8x128xf32>
    %8 = tpu.matmul %7, %0, %cst {dimension_numbers = #tpu.dot_dimension_numbers<[1], [0], [0], [1], [0, 0, 1, 1], [], []>} : vector<8x24xf32>, vector<24x128xf32>, vector<8x128xf32> -> vector<8x128xf32>
    %c0_9 = arith.constant 0 : index
    %c0_10 = arith.constant 0 : index
    %9 = vector.load %arg2[%c0_9, %c0_10] : memref<8x8xf32, #tpu.memory_space<vmem>>, vector<8x8xf32>
    %cst_11 = arith.constant dense<0.000000e+00> : vector<8x128xf32>
    %10 = tpu.matmul %9, %1, %cst_11 {dimension_numbers = #tpu.dot_dimension_numbers<[1], [0], [0], [1], [0, 0, 1, 1], [], []>} : vector<8x8xf32>, vector<8x128xf32>, vector<8x128xf32> -> vector<8x128xf32>
    %11 = arith.addf %8, %10 : vector<8x128xf32>
    %12 = vector.broadcast %2 : vector<1x128xf32> to vector<8x128xf32>
    %13 = arith.addf %11, %12 : vector<8x128xf32>
    %cst_12 = arith.constant 0.000000e+00 : f32
    %14 = vector.broadcast %cst_12 : f32 to vector<8x128xf32>
    %15 = arith.maximumf %13, %14 : vector<8x128xf32>
    %cst_13 = arith.constant dense<0.000000e+00> : vector<8x128xf32>
    %16 = tpu.matmul %15, %3, %cst_13 {dimension_numbers = #tpu.dot_dimension_numbers<[1], [0], [0], [1], [0, 0, 1, 1], [], []>} : vector<8x128xf32>, vector<128x128xf32>, vector<8x128xf32> -> vector<8x128xf32>
    %17 = vector.broadcast %4 : vector<1x128xf32> to vector<8x128xf32>
    %18 = arith.addf %16, %17 : vector<8x128xf32>
    %cst_14 = arith.constant 0.000000e+00 : f32
    %19 = vector.broadcast %cst_14 : f32 to vector<8x128xf32>
    %20 = arith.maximumf %18, %19 : vector<8x128xf32>
    %cst_15 = arith.constant dense<0.000000e+00> : vector<8x128xf32>
    %21 = tpu.matmul %20, %5, %cst_15 {dimension_numbers = #tpu.dot_dimension_numbers<[1], [0], [0], [1], [0, 0, 1, 1], [], []>} : vector<8x128xf32>, vector<128x128xf32>, vector<8x128xf32> -> vector<8x128xf32>
    %22 = vector.broadcast %6 : vector<1x128xf32> to vector<8x128xf32>
    %23 = arith.addf %21, %22 : vector<8x128xf32>
    %24 = vector.extract_strided_slice %23 {offsets = [0, 0], sizes = [8, 2], strides = [1, 1]} : vector<8x128xf32> to vector<8x2xf32>
    %c0_16 = arith.constant 0 : index
    %c0_17 = arith.constant 0 : index
    %25 = vector.load %arg4[%c0_16, %c0_17] : memref<8x2xf32, #tpu.memory_space<vmem>>, vector<8x2xf32>
    tpu.vector_store %arg4[%c0_16, %c0_17], %24 {strides = array<i32>} : memref<8x2xf32, #tpu.memory_space<vmem>>, vector<8x2xf32>,
    return
  }
  func.func @transform_0(%arg0: i32) -> (i32, i32) {
    %c0_i32 = arith.constant 0 : i32
    %c0_i32_0 = arith.constant 0 : i32
    return %arg0, %c0_i32 : i32, i32
  }
  func.func @transform_1(%arg0: i32) -> (i32, i32) {
    %c0_i32 = arith.constant 0 : i32
    %c0_i32_0 = arith.constant 0 : i32
    return %arg0, %c0_i32 : i32, i32
  }
  func.func @transform_2(%arg0: i32) -> (i32, i32) {
    %c0_i32 = arith.constant 0 : i32
    %c0_i32_0 = arith.constant 0 : i32
    %c0_i32_1 = arith.constant 0 : i32
    return %c0_i32, %c0_i32_0 : i32, i32
  }
  func.func @transform_3(%arg0: i32) -> (i32, i32) {
    %c0_i32 = arith.constant 0 : i32
    %c0_i32_0 = arith.constant 0 : i32
    return %arg0, %c0_i32 : i32, i32
  }
}

</mosaic_0001>

<bundles_post_ra>
// kernel: tpu_custom_call.1
= control target key start
LH: loop header
LB: loop body
LE: loop exit
PB: predicated region body
PF: predicated region fallthrough
CT: control target
= control target key end

     0   :  { %8 = vsyncpa [#allocation3], 0  ;;  %s686_s0 = inlined_call_operand.hbm [shape: f32[8,24], index: 0, kind: input, shape index: {}]   ;;  %s687_s1 = inlined_call_operand.hbm [shape: f32[8,8], index: 1, kind: input, shape index: {}]   ;;  %s688_s2 = inlined_call_operand.hbm [shape: f32[312,128], index: 2, kind: input, shape index: {}]   ;;  %s689_s3 = inlined_call_operand.vmem [shape: f32[8,2], index: 3, kind: output, shape index: {}]  }
   0x1   :  { %9 = vsyncpa [#allocation5], 0  ;;  %s603_s12 = smov [#allocation4]   ;;  %s604_s14 = smov [#allocation2]  }
   0x2   :  { %s26_s13 = sshll.u32 %s603_s12, 4  ;;  %s16_s15 = sshll.u32 %s604_s14, 4  ;;  %s27_s13 = int_to_ptr.vmem [resolvable:$true] %s26_s13  ;;  %s17_s15 = int_to_ptr.vmem [resolvable:$true] %s16_s15 }
   0x3   :  { %s547_s16 = scalar_lea.vmem %s27_s13, 128  ;;  %p552_p1 = scmp.lt.s32.totalorder %s27_s13, %s27_s13 }
   0x4   :  { %p548_p0 = scmp.ne.s32.totalorder %s27_s13, %s547_s16  ;;  %p553_p2 = scmp.lt.s32.totalorder %s547_s16, %s547_s16 }
   0x6   :  { %p554_p3 = por %p553_p2, %p552_p1 }
   0x8   :  { %p555_p4 = pnand %p554_p3, %p548_p0 }
   0xa   :  { %558 = shalt.err (!%p555_p4)
}
   0xb   :  { %29 = dma.hbm_to_vmem [thread:$0]  %s687_s1, 128, %s27_s13, [#allocation5]  }
   0xc   :  { %s567_s19 = scalar_lea.vmem %s17_s15, 128  ;;  %p572_p6 = scmp.lt.s32.totalorder %s17_s15, %s17_s15 }
   0xd   :  { %p568_p5 = scmp.ne.s32.totalorder %s17_s15, %s567_s19  ;;  %p573_p7 = scmp.lt.s32.totalorder %s567_s19, %s567_s19 }
   0xf   :  { %p574_p8 = por %p573_p7, %p572_p6 }
  0x11   :  { %p575_p9 = pnand %p574_p8, %p568_p5 }
  0x13   :  { %578 = shalt.err (!%p575_p9)
}
  0x14   :  { %19 = dma.hbm_to_vmem [thread:$0]  %s686_s0, 128, %s17_s15, [#allocation3]  }
  0x15   :  { %s605_s22 = smov [#allocation6]  }
  0x16   :  { %s35_s23 = sshll.u32 %s605_s22, 4  ;;  %s36_s23 = int_to_ptr.vmem [resolvable:$true] %s35_s23 }
  0x17   :  { %s587_s24 = scalar_lea.vmem %s36_s23, 4992  ;;  %p592_p11 = scmp.lt.s32.totalorder %s36_s23, %s36_s23 }
  0x18   :  { %p588_p10 = scmp.ne.s32.totalorder %s36_s23, %s587_s24  ;;  %p593_p12 = scmp.lt.s32.totalorder %s587_s24, %s587_s24 }
  0x1a   :  { %p594_p13 = por %p593_p12, %p592_p11 }
  0x1c   :  { %p595_p0 = pnand %p594_p13, %p588_p10 }
  0x1e   :  { %598 = shalt.err (!%p595_p0)
}
  0x1f   :  { %s606_s1 = smov 128   ;;  %s607_s25 = smov 8  }
  0x20   :  { %41 = dma.hbm_to_vmem [thread:$0]  %s688_s2, 4992, %s36_s23, [#allocation5], %s606_s1, %s606_s1, %s607_s25  }
  0x21   :  { %599 = dma.done.wait [#allocation3], 128  }
  0x22   :  { %600 = vsyncadd [#allocation3], 4294967168 }
  0x23   :  { %601 = dma.done.wait [#allocation5], 5120  }
  0x24   :  { %602 = vsyncadd [#allocation5], 4294962176  ;;  %v608_v0 = vmov 0.0   ;;  %vm609_vm0 = vmmov 0   ;;  %vm92_vm1 = vcmask 64512   ;;  %v53_v1 = vld [vmem:[#allocation6 + $0x10] sm:$0xff] }
  0x25   :  { %453 = vmatprep.subr.mxu1 %v608_v0  ;;  %448 = vmatprep.subr.mxu0 %v608_v0  ;;  %v54_v2 = vld [vmem:[#allocation6 + $0x18] sm:$0xff]  ;;  %v52_v3 = vld [vmem:[#allocation6 + $0x8] sm:$0xff]  ;;  %v51_v5 = vld [vmem:[#allocation6] sm:$0xff]  ;;  %vm166_vm2 = vcmask 195584   ;;  %vm395_vm3 = vcmask 15360  }
  0x26   :  { %450 = vmatprep.mubr.msk.f32.mxu0 %vm609_vm0, %v608_v0  ;;  %459 = vmatprep.mubr.msk.f32.mxu1 %vm609_vm0, %v608_v0  ;;  %v91_v4 = vld [vmem:[#allocation4] sm:$0xff]  ;;  %v71_v6 = vld [vmem:[#allocation6 + $0xa0] sm:$0xff]  ;;  %v90_v7 = vld [vmem:[#allocation2] sm:$0xff] }
  0x27   :  { %454 = vmatpush3.msra.mxu1 %v53_v1  ;;  %449 = vmatpush3.msra.mxu0 %v54_v2  ;;  %v70_v8 = vld [vmem:[#allocation6 + $0x98] sm:$0xff]  ;;  %v69_v9 = vld [vmem:[#allocation6 + $0x90] sm:$0xff]  ;;  %v68_v10 = vld [vmem:[#allocation6 + $0x88] sm:$0xff] }
  0x28   :  { %455 = vmatprep.subr.mxu1 %v608_v0  ;;  %451 = vmatmul.mubr.msk.f32.vlgmr.msra.gmra.mxu0 %vm92_vm1, %v91_v4  ;;  %v67_v11 = vld [vmem:[#allocation6 + $0x80] sm:$0xff]  ;;  %v66_v12 = vld [vmem:[#allocation6 + $0x78] sm:$0xff]  ;;  %v65_v13 = vld [vmem:[#allocation6 + $0x70] sm:$0xff] }
  0x29   :  { %456 = vmatpush3.msra.mxu1 %v52_v3  ;;  %462 = vmatprep.subr.mxu0 %v608_v0  ;;  %v64_v14 = vld [vmem:[#allocation6 + $0x68] sm:$0xff]  ;;  %v63_v15 = vld [vmem:[#allocation6 + $0x60] sm:$0xff]  ;;  %v62_v16 = vld [vmem:[#allocation6 + $0x58] sm:$0xff] }
  0x2a   :  { %457 = vmatprep.subr.mxu1 %v608_v0  ;;  %463 = vmatpush3.msra.mxu0 %v71_v6  ;;  %v61_v17 = vld [vmem:[#allocation6 + $0x50] sm:$0xff]  ;;  %v60_v18 = vld [vmem:[#allocation6 + $0x48] sm:$0xff]  ;;  %v59_v19 = vld [vmem:[#allocation6 + $0x40] sm:$0xff] }
  0x2b   :  { %458 = vmatpush3.msra.mxu1 %v51_v5  ;;  %464 = vmatprep.subr.mxu0 %v608_v0  ;;  %v58_v20 = vld [vmem:[#allocation6 + $0x38] sm:$0xff]  ;;  %v57_v21 = vld [vmem:[#allocation6 + $0x30] sm:$0xff]  ;;  %v56_v22 = vld [vmem:[#allocation6 + $0x28] sm:$0xff] }
  0x2c   :  { %460 = vmatmul.mubr.msk.f32.vlgmr.msra.gmra.mxu1 %vm166_vm2, %v90_v7  ;;  %465 = vmatpush3.msra.mxu0 %v70_v8  ;;  %v88_v23 = vld [vmem:[#allocation6 + $0x128] sm:$0xff]  ;;  %v87_v24 = vld [vmem:[#allocation6 + $0x120] sm:$0xff]  ;;  %v86_v25 = vld [vmem:[#allocation6 + $0x118] sm:$0xff] }
  0x2d   :  { %466 = vmatprep.subr.mxu0 %v608_v0  ;;  %494 = vmatprep.mubr.msk.f32.mxu0 %vm609_vm0, %v608_v0  ;;  %v85_v26 = vld [vmem:[#allocation6 + $0x110] sm:$0xff]  ;;  %v84_v27 = vld [vmem:[#allocation6 + $0x108] sm:$0xff]  ;;  %v83_v28 = vld [vmem:[#allocation6 + $0x100] sm:$0xff] }
  0x2e   :  { %467 = vmatpush3.msra.mxu0 %v69_v9  ;;  %497 = vmatprep.subr.mxu1 %v608_v0  ;;  %v82_v29 = vld [vmem:[#allocation6 + $0xf8] sm:$0xff]  ;;  %v81_v30 = vld [vmem:[#allocation6 + $0xf0] sm:$0xff]  ;;  %v80_v31 = vld [vmem:[#allocation6 + $0xe8] sm:$0xff] }
  0x2f   :  { %468 = vmatprep.subr.mxu0 %v608_v0  ;;  %529 = vmatprep.mubr.msk.f32.mxu1 %vm609_vm0, %v608_v0  ;;  %v79_v32 = vld [vmem:[#allocation6 + $0xe0] sm:$0xff]  ;;  %v78_v33 = vld [vmem:[#allocation6 + $0xd8] sm:$0xff]  ;;  %v77_v34 = vld [vmem:[#allocation6 + $0xd0] sm:$0xff] }
  0x30   :  { %469 = vmatpush3.msra.mxu0 %v68_v10  ;;  %498 = vmatpush3.msra.mxu1 %v88_v23  ;;  %v76_v35 = vld [vmem:[#allocation6 + $0xc8] sm:$0xff]  ;;  %v405_v38 = vld [vmem:[#allocation6 + $0x20] ss:$0 sm:$0xff]  ;;  %v74_v45 = vld [vmem:[#allocation6 + $0xb8] sm:$0xff] }
  0x31   :  { %470 = vmatprep.subr.mxu0 %v608_v0  ;;  %499 = vmatprep.subr.mxu1 %v608_v0  ;;  %v75_v44 = vld [vmem:[#allocation6 + $0xc0] sm:$0xff]  ;;  %v73_v46 = vld [vmem:[#allocation6 + $0xb0] sm:$0xff]  ;;  %v406_v47 = vld [vmem:[#allocation6 + $0xa8] ss:$0 sm:$0xff] }
  0x32   :  { %471 = vmatpush3.msra.mxu0 %v67_v11  ;;  %500 = vmatpush3.msra.mxu1 %v87_v24  ;;  %v407_v52 = vld [vmem:[#allocation6 + $0x130] ss:$0 sm:$0xff] }
  0x33   :  { %472 = vmatprep.subr.mxu0 %v608_v0  ;;  %501 = vmatprep.subr.mxu1 %v608_v0 }
  0x34   :  { %473 = vmatpush3.msra.mxu0 %v66_v12  ;;  %502 = vmatpush3.msra.mxu1 %v86_v25 }
  0x35   :  { %474 = vmatprep.subr.mxu0 %v608_v0  ;;  %503 = vmatprep.subr.mxu1 %v608_v0 }
  0x36   :  { %475 = vmatpush3.msra.mxu0 %v65_v13  ;;  %504 = vmatpush3.msra.mxu1 %v85_v26 }
  0x37   :  { %476 = vmatprep.subr.mxu0 %v608_v0  ;;  %505 = vmatprep.subr.mxu1 %v608_v0 }
  0x38   :  { %477 = vmatpush3.msra.mxu0 %v64_v14  ;;  %506 = vmatpush3.msra.mxu1 %v84_v27 }
  0x39   :  { %478 = vmatprep.subr.mxu0 %v608_v0  ;;  %507 = vmatprep.subr.mxu1 %v608_v0 }
  0x3a   :  { %479 = vmatpush3.msra.mxu0 %v63_v15  ;;  %508 = vmatpush3.msra.mxu1 %v83_v28 }
  0x3b   :  { %480 = vmatprep.subr.mxu0 %v608_v0  ;;  %509 = vmatprep.subr.mxu1 %v608_v0 }
  0x3c   :  { %481 = vmatpush3.msra.mxu0 %v62_v16  ;;  %510 = vmatpush3.msra.mxu1 %v82_v29 }
  0x3d   :  { %482 = vmatprep.subr.mxu0 %v608_v0  ;;  %511 = vmatprep.subr.mxu1 %v608_v0 }
  0x3e   :  { %483 = vmatpush3.msra.mxu0 %v61_v17  ;;  %512 = vmatpush3.msra.mxu1 %v81_v30 }
  0x3f   :  { %484 = vmatprep.subr.mxu0 %v608_v0  ;;  %513 = vmatprep.subr.mxu1 %v608_v0 }
  0x40   :  { %485 = vmatpush3.msra.mxu0 %v60_v18  ;;  %514 = vmatpush3.msra.mxu1 %v80_v31 }
  0x41   :  { %486 = vmatprep.subr.mxu0 %v608_v0  ;;  %515 = vmatprep.subr.mxu1 %v608_v0 }
  0x42   :  { %487 = vmatpush3.msra.mxu0 %v59_v19  ;;  %516 = vmatpush3.msra.mxu1 %v79_v32 }
  0x43   :  { %488 = vmatprep.subr.mxu0 %v608_v0  ;;  %517 = vmatprep.subr.mxu1 %v608_v0 }
  0x44   :  { %489 = vmatpush3.msra.mxu0 %v58_v20  ;;  %518 = vmatpush3.msra.mxu1 %v78_v33 }
  0x45   :  { %490 = vmatprep.subr.mxu0 %v608_v0  ;;  %519 = vmatprep.subr.mxu1 %v608_v0 }
  0x46   :  { %491 = vmatpush3.msra.mxu0 %v57_v21  ;;  %520 = vmatpush3.msra.mxu1 %v77_v34 }
  0x47   :  { %492 = vmatprep.subr.mxu0 %v608_v0  ;;  %521 = vmatprep.subr.mxu1 %v608_v0 }
  0x48   :  { %493 = vmatpush3.msra.mxu0 %v56_v22  ;;  %522 = vmatpush3.msra.mxu1 %v76_v35 }
  0x49   :  { %523 = vmatprep.subr.mxu1 %v608_v0 }
  0x4a   :  { %524 = vmatpush3.msra.mxu1 %v75_v44 }
  0x4b   :  { %525 = vmatprep.subr.mxu1 %v608_v0 }
  0x4c   :  { %526 = vmatpush3.msra.mxu1 %v74_v45 }
  0x4d   :  { %527 = vmatprep.subr.mxu1 %v608_v0 }
  0x4e   :  { %528 = vmatpush3.msra.mxu1 %v73_v46 }
  0xe8   :  { %v162_v36 = vpop.f32.mrf.mxu0 }
  0xea   :  { %v452_v37 = vpop.f32.mrf.mxu0 }
  0xec   :  { %v236_v39 = vpop.f32.mrf.mxu1 }
  0xed   :  { %v237_v40 = vadd.f32 %v236_v39, %v162_v36 }
  0xee   :  { %v461_v41 = vpop.f32.mrf.mxu1 }
  0xef   :  { %v244_v42 = vadd.f32 %v405_v38, %v237_v40 }
  0xf1   :  { %v245_v43 = vmax.f32 %v244_v42, 0.0 }
  0xf3   :  { %495 = vmatmul.mubr.f32.vlgmr.msra.gmra.mxu0 %v245_v43 }
 0x1b3   :  { %v316_v48 = vpop.f32.mrf.mxu0 }
 0x1b4   :  { %v317_v49 = vadd.f32 %v406_v47, %v316_v48 }
 0x1b5   :  { %v496_v50 = vpop.f32.mrf.mxu0 }
 0x1b6   :  { %v320_v51 = vmax.f32 %v317_v49, 0.0 }
 0x1b8   :  { %530 = vmatmul.mubr.f32.vlgmr.msra.gmra.mxu1 %v320_v51 }
 0x278   :  { %v391_v53 = vpop.f32.mrf.mxu1 }
 0x279   :  { %v392_v54 = vadd.f32 %v407_v52, %v391_v53 }
 0x27a   :  { %v531_v55 = vpop.f32.mrf.mxu1 }
 0x27b   :  { %396 = vst.msk [vmem:[%s689_s3] sm:$0xff] %vm395_vm3, %v392_v54 }
 0x27c   :  { %401 = vsyncpa [#allocation3], 1 }
 0x27d   :  { %402 = vsyncpa [#allocation5], 1 }

</bundles_post_ra>
